<compile_context>
chip_gen: v5e
topology: v5e:2x2
jax: 0.10.0
libtpu: 0.0.40
codegen_flags: <defaults>
</compile_context>

<pallas_src>
import jax
import jax.numpy as jnp
from jax.experimental import pallas as pl
from jax.experimental.pallas import tpu as pltpu

D_IN, H1, H2, D_OUT = 784, 128, 64, 10


def mlp_kernel(x_ref, w1_ref, b1_ref, w2_ref, b2_ref, w3_ref, b3_ref, o_ref):
    # Layer 1: cast x to bf16 in-vreg (no wrapper HBM round trip); bf16 x bf16
    # MXU matmul with f32 accumulation; bias/ReLU in f32.
    x = x_ref[...].astype(jnp.bfloat16)
    h1 = jnp.dot(x, w1_ref[...], preferred_element_type=jnp.float32)
    h1 = jnp.maximum(h1 + b1_ref[...], 0.0)

    # Layer 2: bf16 MXU matmul, f32 accumulate, f32 bias/ReLU.
    h2 = jnp.dot(h1.astype(jnp.bfloat16), w2_ref[...],
                 preferred_element_type=jnp.float32)
    h2 = jnp.maximum(h2 + b2_ref[...], 0.0)

    # Layer 3: bf16 MXU matmul + numerically-stable softmax over dim=1.
    logits = jnp.dot(h2.astype(jnp.bfloat16), w3_ref[...],
                     preferred_element_type=jnp.float32)
    logits = logits + b3_ref[...]
    m = jnp.max(logits, axis=1, keepdims=True)
    e = jnp.exp(logits - m)
    s = jnp.sum(e, axis=1, keepdims=True)
    # Exact reciprocal (still EUP, negligible cost here) so rows sum to 1
    # within f32 rounding.
    o_ref[...] = (e * pl.reciprocal(s, approx=False)).astype(o_ref.dtype)


def _round_up(v, m):
    return ((v + m - 1) // m) * m


def deepnet_fc(x, params, *, batch_tile=1024):
    """x: (B, 784) float32 or bfloat16. params: dict of w1,b1,w2,b2,w3,b3.

    batch_tile is an upper bound on the per-step batch tile; it is capped so
    the grid has >= 2 steps whenever B allows (keeps both v7x TensorCores
    fed). Must be a multiple of 16.
    """
    B = x.shape[0]
    assert x.shape[1] == D_IN
    assert batch_tile % 16 == 0, "batch_tile must be a multiple of 16"

    # Effective tile: big enough to amortize per-step overhead, small enough
    # that the grid has at least 2 steps when B > 16 (v7x dual-TC sharing).
    tile = max(16, min(batch_tile, _round_up(pl.cdiv(B, 2), 16)))
    num_tiles = pl.cdiv(B, tile)   # last block may be partial -> masked store

    # Weights: bf16 for the MXU (one-time ~0.25 MiB HBM cost; VMEM-resident
    # across grid steps via constant index_maps). Biases stay f32.
    w1 = params["w1"].astype(jnp.bfloat16)
    w2 = params["w2"].astype(jnp.bfloat16)
    w3 = params["w3"].astype(jnp.bfloat16)
    b1 = params["b1"].astype(jnp.float32)
    b2 = params["b2"].astype(jnp.float32)
    b3 = params["b3"].astype(jnp.float32)

    full = lambda shape: pl.BlockSpec(shape, lambda i: (0, 0))

    weight_bytes = (
        D_IN * H1 * 2 + H1 * 4            # w1 (bf16), b1 (f32)
        + H1 * H2 * 2 + H2 * 4            # w2, b2
        + H2 * D_OUT * 2 + D_OUT * 4      # w3, b3
    )
    cost = pl.CostEstimate(
        flops=2 * B * (D_IN * H1 + H1 * H2 + H2 * D_OUT),
        transcendentals=B * (D_OUT + 1),  # exp per class + reciprocal
        bytes_accessed=B * D_IN * x.dtype.itemsize
        + weight_bytes
        + B * D_OUT * 4,
    )

    out = pl.pallas_call(
        mlp_kernel,
        out_shape=jax.ShapeDtypeStruct((B, D_OUT), jnp.float32),
        grid=(num_tiles,),
        in_specs=[
            pl.BlockSpec((tile, D_IN), lambda i: (i, 0)),  # x tiled over batch
            full((D_IN, H1)),
            full((1, H1)),
            full((H1, H2)),
            full((1, H2)),
            full((H2, D_OUT)),
            full((1, D_OUT)),
        ],
        out_specs=pl.BlockSpec((tile, D_OUT), lambda i: (i, 0)),
        compiler_params=pltpu.CompilerParams(
            dimension_semantics=("parallel",),
        ),
        cost_estimate=cost,
    )(x, w1, b1, w2, b2, w3, b3)

    return out


def init_params(key):
    """Deterministic synthetic init matching nn.Linear shapes (stored as (in, out))."""
    ks = jax.random.split(key, 6)

    def linear(kw, kb, fan_in, fan_out):
        bound = 1.0 / jnp.sqrt(fan_in)
        w = jax.random.uniform(kw, (fan_in, fan_out), jnp.float32, -bound, bound)
        b = jax.random.uniform(kb, (1, fan_out), jnp.float32, -bound, bound)
        return w, b

    w1, b1 = linear(ks[0], ks[1], D_IN, H1)
    w2, b2 = linear(ks[2], ks[3], H1, H2)
    w3, b3 = linear(ks[4], ks[5], H2, D_OUT)
    return {"w1": w1, "b1": b1, "w2": w2, "b2": b2, "w3": w3, "b3": b3}


def reference(x, p):
    """Pure-f32 reference (kernel uses bf16 MXU operands, hence looser tolerance)."""
    h1 = jnp.maximum(x @ p["w1"] + p["b1"], 0.0)
    h2 = jnp.maximum(h1 @ p["w2"] + p["b2"], 0.0)
    logits = h2 @ p["w3"] + p["b3"]
    return jax.nn.softmax(logits, axis=1)


if __name__ == "__main__":
    key = jax.random.PRNGKey(0)
    k_x, k_p = jax.random.split(key)
    params = init_params(k_p)

    # Small ragged batch: exercises the partial-last-block path and a
    # multi-step grid.
    B = 37
    x = jax.random.normal(k_x, (B, D_IN), jnp.float32)
    ref = reference(x, params)

    # Explicit small tile: 3 grid steps, last block partial (5 valid rows).
    out_small_tile = jax.block_until_ready(deepnet_fc(x, params, batch_tile=16))
    assert out_small_tile.shape == (B, D_OUT)
    # bf16 MXU operands -> loosen tolerance vs. the f32 reference.
    assert jnp.allclose(out_small_tile, ref, atol=3e-2, rtol=3e-2)
    # Exact reciprocal + f32 softmax math -> rows sum to 1 tightly.
    assert jnp.allclose(jnp.sum(out_small_tile, axis=1), 1.0, atol=2e-3)

    # Default (performance) path: tile capped to 32 here so the grid still has
    # 2 steps; with large B the tile grows to 1024.
    out_default = jax.block_until_ready(deepnet_fc(x, params))
    assert out_default.shape == (B, D_OUT)
    assert jnp.allclose(out_default, ref, atol=3e-2, rtol=3e-2)
    assert jnp.allclose(jnp.sum(out_default, axis=1), 1.0, atol=2e-3)

    print("KERNEL_OK")
</pallas_src>

<mosaic_0001>
module attributes {stable_mosaic.version = 11 : i64} {
  func.func @mlp_kernel(%arg0: i32, %arg1: memref<16x784xf32, #tpu.memory_space<vmem>>, %arg2: memref<784x128xbf16, #tpu.memory_space<vmem>>, %arg3: memref<1x128xf32, #tpu.memory_space<vmem>>, %arg4: memref<128x64xbf16, #tpu.memory_space<vmem>>, %arg5: memref<1x64xf32, #tpu.memory_space<vmem>>, %arg6: memref<64x10xbf16, #tpu.memory_space<vmem>>, %arg7: memref<1x10xf32, #tpu.memory_space<vmem>>, %arg8: memref<16x10xf32, #tpu.memory_space<vmem>>) attributes {dimension_semantics = [#tpu.dimension_semantics<parallel>], iteration_bounds = array<i64: 3>, scalar_prefetch = 0 : i64, scratch_operands = 0 : i64, tpu.core_type = #tpu.core_type<tc>, window_params = [{transform_indices = @transform_0, window_bounds = array<i64: 16, 784>}, {pipeline_mode = #tpu.pipeline_mode<synchronous>, transform_indices = @transform_1, window_bounds = array<i64: 784, 128>}, {pipeline_mode = #tpu.pipeline_mode<synchronous>, transform_indices = @transform_2, window_bounds = array<i64: 1, 128>}, {pipeline_mode = #tpu.pipeline_mode<synchronous>, transform_indices = @transform_3, window_bounds = array<i64: 128, 64>}, {pipeline_mode = #tpu.pipeline_mode<synchronous>, transform_indices = @transform_4, window_bounds = array<i64: 1, 64>}, {pipeline_mode = #tpu.pipeline_mode<synchronous>, transform_indices = @transform_5, window_bounds = array<i64: 64, 10>}, {pipeline_mode = #tpu.pipeline_mode<synchronous>, transform_indices = @transform_6, window_bounds = array<i64: 1, 10>}, {transform_indices = @transform_7, window_bounds = array<i64: 16, 10>}]} {
    %c0 = arith.constant 0 : index
    %c0_0 = arith.constant 0 : index
    %0 = vector.load %arg1[%c0, %c0_0] : memref<16x784xf32, #tpu.memory_space<vmem>>, vector<16x784xf32>
    %1 = arith.truncf %0 : vector<16x784xf32> to vector<16x784xbf16>
    %c0_1 = arith.constant 0 : index
    %c0_2 = arith.constant 0 : index
    %2 = vector.load %arg2[%c0_1, %c0_2] : memref<784x128xbf16, #tpu.memory_space<vmem>>, vector<784x128xbf16>
    %cst = arith.constant dense<0.000000e+00> : vector<16x128xf32>
    %3 = tpu.matmul %1, %2, %cst {dimension_numbers = #tpu.dot_dimension_numbers<[1], [0], [0], [1], [0, 0, 1, 1], [], []>} : vector<16x784xbf16>, vector<784x128xbf16>, vector<16x128xf32> -> vector<16x128xf32>
    %c0_3 = arith.constant 0 : index
    %c0_4 = arith.constant 0 : index
    %4 = vector.load %arg3[%c0_3, %c0_4] : memref<1x128xf32, #tpu.memory_space<vmem>>, vector<1x128xf32>
    %5 = vector.broadcast %4 : vector<1x128xf32> to vector<16x128xf32>
    %6 = arith.addf %3, %5 : vector<16x128xf32>
    %cst_5 = arith.constant 0.000000e+00 : f32
    %7 = vector.broadcast %cst_5 : f32 to vector<16x128xf32>
    %8 = arith.maximumf %6, %7 : vector<16x128xf32>
    %9 = arith.truncf %8 : vector<16x128xf32> to vector<16x128xbf16>
    %c0_6 = arith.constant 0 : index
    %c0_7 = arith.constant 0 : index
    %10 = vector.load %arg4[%c0_6, %c0_7] : memref<128x64xbf16, #tpu.memory_space<vmem>>, vector<128x64xbf16>
    %cst_8 = arith.constant dense<0.000000e+00> : vector<16x64xf32>
    %11 = tpu.matmul %9, %10, %cst_8 {dimension_numbers = #tpu.dot_dimension_numbers<[1], [0], [0], [1], [0, 0, 1, 1], [], []>} : vector<16x128xbf16>, vector<128x64xbf16>, vector<16x64xf32> -> vector<16x64xf32>
    %c0_9 = arith.constant 0 : index
    %c0_10 = arith.constant 0 : index
    %12 = vector.load %arg5[%c0_9, %c0_10] : memref<1x64xf32, #tpu.memory_space<vmem>>, vector<1x64xf32>
    %13 = vector.broadcast %12 : vector<1x64xf32> to vector<16x64xf32>
    %14 = arith.addf %11, %13 : vector<16x64xf32>
    %cst_11 = arith.constant 0.000000e+00 : f32
    %15 = vector.broadcast %cst_11 : f32 to vector<16x64xf32>
    %16 = arith.maximumf %14, %15 : vector<16x64xf32>
    %17 = arith.truncf %16 : vector<16x64xf32> to vector<16x64xbf16>
    %c0_12 = arith.constant 0 : index
    %c0_13 = arith.constant 0 : index
    %18 = vector.load %arg6[%c0_12, %c0_13] : memref<64x10xbf16, #tpu.memory_space<vmem>>, vector<64x10xbf16>
    %cst_14 = arith.constant dense<0.000000e+00> : vector<16x10xf32>
    %19 = tpu.matmul %17, %18, %cst_14 {dimension_numbers = #tpu.dot_dimension_numbers<[1], [0], [0], [1], [0, 0, 1, 1], [], []>} : vector<16x64xbf16>, vector<64x10xbf16>, vector<16x10xf32> -> vector<16x10xf32>
    %c0_15 = arith.constant 0 : index
    %c0_16 = arith.constant 0 : index
    %20 = vector.load %arg7[%c0_15, %c0_16] : memref<1x10xf32, #tpu.memory_space<vmem>>, vector<1x10xf32>
    %21 = vector.broadcast %20 : vector<1x10xf32> to vector<16x10xf32>
    %22 = arith.addf %19, %21 : vector<16x10xf32>
    %cst_17 = arith.constant dense<0xFF800000> : vector<16xf32>
    %23 = vector.multi_reduction <maximumf>, %22, %cst_17 [1] : vector<16x10xf32> to vector<16xf32>
    %24 = vector.shape_cast %23 : vector<16xf32> to vector<16x1xf32>
    %25 = vector.broadcast %24 : vector<16x1xf32> to vector<16x10xf32>
    %26 = arith.subf %22, %25 : vector<16x10xf32>
    %27 = math.exp %26 : vector<16x10xf32>
    %cst_18 = arith.constant dense<0.000000e+00> : vector<16xf32>
    %28 = vector.multi_reduction <add>, %27, %cst_18 [1] : vector<16x10xf32> to vector<16xf32>
    %29 = vector.shape_cast %28 : vector<16xf32> to vector<16x1xf32>
    %30 = tpu.reciprocal %29 : vector<16x1xf32> -> vector<16x1xf32>
    %31 = vector.broadcast %30 : vector<16x1xf32> to vector<16x10xf32>
    %32 = arith.mulf %27, %31 : vector<16x10xf32>
    %c0_19 = arith.constant 0 : index
    %c0_20 = arith.constant 0 : index
    %33 = vector.load %arg8[%c0_19, %c0_20] : memref<16x10xf32, #tpu.memory_space<vmem>>, vector<16x10xf32>
    tpu.vector_store %arg8[%c0_19, %c0_20], %32 {strides = array<i32>} : memref<16x10xf32, #tpu.memory_space<vmem>>, vector<16x10xf32>,
    return
  }
  func.func @transform_0(%arg0: i32) -> (i32, i32) {
    %c0_i32 = arith.constant 0 : i32
    %c0_i32_0 = arith.constant 0 : i32
    return %arg0, %c0_i32 : i32, i32
  }
  func.func @transform_1(%arg0: i32) -> (i32, i32) {
    %c0_i32 = arith.constant 0 : i32
    %c0_i32_0 = arith.constant 0 : i32
    %c0_i32_1 = arith.constant 0 : i32
    return %c0_i32, %c0_i32_0 : i32, i32
  }
  func.func @transform_2(%arg0: i32) -> (i32, i32) {
    %c0_i32 = arith.constant 0 : i32
    %c0_i32_0 = arith.constant 0 : i32
    %c0_i32_1 = arith.constant 0 : i32
    return %c0_i32, %c0_i32_0 : i32, i32
  }
  func.func @transform_3(%arg0: i32) -> (i32, i32) {
    %c0_i32 = arith.constant 0 : i32
    %c0_i32_0 = arith.constant 0 : i32
    %c0_i32_1 = arith.constant 0 : i32
    return %c0_i32, %c0_i32_0 : i32, i32
  }
  func.func @transform_4(%arg0: i32) -> (i32, i32) {
    %c0_i32 = arith.constant 0 : i32
    %c0_i32_0 = arith.constant 0 : i32
    %c0_i32_1 = arith.constant 0 : i32
    return %c0_i32, %c0_i32_0 : i32, i32
  }
  func.func @transform_5(%arg0: i32) -> (i32, i32) {
    %c0_i32 = arith.constant 0 : i32
    %c0_i32_0 = arith.constant 0 : i32
    %c0_i32_1 = arith.constant 0 : i32
    return %c0_i32, %c0_i32_0 : i32, i32
  }
  func.func @transform_6(%arg0: i32) -> (i32, i32) {
    %c0_i32 = arith.constant 0 : i32
    %c0_i32_0 = arith.constant 0 : i32
    %c0_i32_1 = arith.constant 0 : i32
    return %c0_i32, %c0_i32_0 : i32, i32
  }
  func.func @transform_7(%arg0: i32) -> (i32, i32) {
    %c0_i32 = arith.constant 0 : i32
    %c0_i32_0 = arith.constant 0 : i32
    return %arg0, %c0_i32 : i32, i32
  }
}

</mosaic_0001>

<bundles_post_ra>
// kernel: tpu_custom_call.1
= control target key start
LH: loop header
LB: loop body
LE: loop exit
PB: predicated region body
PF: predicated region fallthrough
CT: control target
= control target key end

     0   :  { %12 = vsyncpa [#allocation3], 0  ;;  %s2211_s0 = inlined_call_operand.hbm [shape: f32[37,784], index: 0, kind: input, shape index: {}]   ;;  %s2212_s1 = inlined_call_operand.hbm [shape: bf16[784,128], index: 1, kind: input, shape index: {}]   ;;  %s2213_s2 = inlined_call_operand.vmem [shape: f32[1,128], index: 2, kind: input, shape index: {}]   ;;  %s2214_s3 = inlined_call_operand.vmem [shape: bf16[128,64], index: 3, kind: input, shape index: {}]   ;;  %s2215_s4 = inlined_call_operand.vmem [shape: f32[1,64], index: 4, kind: input, shape index: {}]   ;;  %s2216_s5 = inlined_call_operand.vmem [shape: bf16[64,10], index: 5, kind: input, shape index: {}]   ;;  %s2217_s6 = inlined_call_operand.vmem [shape: f32[1,10], index: 6, kind: input, shape index: {}]   ;;  %s2218_s7 = inlined_call_operand.vmem [shape: f32[37,10], index: 7, kind: output, shape index: {}]  }
   0x1   :  { %14 = vsyncpa [#allocation3 + $0x1], 0 }
   0x2   :  { %15 = vsyncpa [#allocation5], 0  ;;  %s1972_s24 = smov 0   ;;  %s1974_s25 = smov 0  }
   0x3   :  { %s1976_s26 = smov 0   ;;  %s1978_s27 = smov 0  }
   0x4 LB: > { %s1991_s28 = sadd.s32 4294967295, %s1892_s27   ;;  %s1994_s29 = sadd.s32 1, %s1892_s27   ;;  %s1892_s27 = sphi %s1978_s27, %s2230_s27   ;;  %s1888_s26 = sphi %s1976_s26, %s2229_s26   ;;  %s1884_s25 = sphi %s1974_s25, %s2228_s25   ;;  %s1880_s24 = sphi %s1972_s24, %s2227_s24  }
   0x5   : > { %s25_s30 = ssub.s32 %s1892_s27, %s1994_s29  ;;  %s28_s8 = sadd.s32 1, %s1888_s26 }
   0x6   : > { %p26_p0 = scmp.eq.s32.totalorder %s25_s30, 0  ;;  %p35_p1 = scmp.ne.s32.totalorder %s1888_s26, %s1884_s25 }
   0x7   : > { %p36_p2 = scmp.eq.s32.totalorder %s1892_s27, 0  ;;  %p41_p3 = scmp.ne.s32.totalorder %s1884_s25, %s1880_s24 }
   0x8   : > { %s2004_s9 = scalar_select %p26_p0, %s1888_s26, %s28_s8  }
   0x9   : > { %p2006_p4 = por %p36_p2, %p35_p1  ;;  %p2219_p5 = scmp.eq.s32.totalorder %s1991_s28, 0 }
   0xa   : > { %p191_p6 = scmp.eq.s32.totalorder %s1991_s28, 2  ;;  %p1287_p7 = scmp.ge.s32.totalorder %s1892_s27, 1 }
   0xb   : > { %p2015_p8 = por %p2219_p5, %p41_p3  ;;  %p204_p9 = scmp.lt.s32.totalorder %s1892_s27, 4 }
   0xc   : > { %p2020_p10 = por %p191_p6, %p35_p1  ;;  %s215_s16 = sshll.u32 %s2212_s1, 4  ;;  %s216_s16 = int_to_ptr.hbm [resolvable:$true] %s215_s16 }
   0xd   : > { %p2024_p11 = pnand %p1287_p7, %p204_p9  ;;  %s1926_s17 = smov [#allocation4]  }
   0xe   : > { %s217_s18 = sshll.u32 %s1926_s17, 4  ;;  %s1927_s19 = smov 64   ;;  %s218_s18 = int_to_ptr.vmem [resolvable:$true] %s217_s18 }
   0xf   : > { %p1635_p12 = pneg %p2024_p11  ;;  %s1928_s20 = smov 4  }
  0x10   : > { %p1289_p0 = scmp.ge.s32.totalorder %s1892_s27, 3 }
  0x11   : > { %p1636_p13 = pnand %p1635_p12, %p2219_p5 }
  0x12   : > { %242 = sbr.rel (%p1289_p0) target bundleno = 64 (0x40), region = 40 }
  0x13   : > { %1638 = dma.hbm_to_vmem [thread:$0]  (!%p1636_p13), %s216_s16, 6272, %s218_s18, [#allocation5], %s1927_s19, %s1927_s19, %s1928_s20  }
  0x17   : > { %245 = sbr.rel (!%p2006_p4) target bundleno = 64 (0x40), region = 44  ;;  %s246_s21 = sand.u32 (%p2006_p4), 1, %s1888_s26  }
  0x18   : > { %s1290_s22 = sshll.u32 (%p2006_p4), %s1892_s27, 1  ;;  %s1627_s23 = smul.u32 (%p2006_p4), 112, %s246_s21 }
  0x19   : > { %s252_s24 = ssub.s32 (%p2006_p4), 5, %s1290_s22  ;;  %s2040_s15 = scalar_lea.sflag (%p2006_p4), [#allocation3], %s246_s21 }
  0x1a   : > { %p253_p1 = scmp.lt.s32.totalorder (%p2006_p4), %s252_s24, 2  ;;  %s250_s16 = scalar_lea.vmem (%p2006_p4), [#allocation2], %s1627_s23 }
  0x1c   : > { %s2232_s24 = smov (!%p253_p1, %s252_s24), 2 }
  0x1d   : > { %s1292_s30 = smul.u32 56, %s2232_s24 }
  0x1f   : > { %s257_s8 = ssub.s32 112, %s1292_s30 }
  0x20   : > { %s258_s14 = sshll.u32 %s257_s8, 4 }
  0x21   : > { %259 = vsyncadd %s2040_s15, %s258_s14  ;;  %p2043_p2 = scmp.ne.s32.totalorder %s1292_s30, 0  ;;  %s1628_s17 = smul.u32 112, %s1892_s27 }
  0x22   : > { %s2048_s18 = sshll.u32 %s250_s16, 4  ;;  %s2050_s19 = smul.u32 896, %s2232_s24  ;;  %s268_s18 = int_to_ptr.vmem [resolvable:$true] %s2048_s18 }
  0x23   : > { %s263_s21 = scalar_lea.hbm %s2211_s0, %s1628_s17  ;;  %s1794_s17 = scalar_lea.hbm %s2211_s0, 280 }
  0x24   : > { %s265_s23 = sshll.u32 %s263_s21, 4  ;;  %s1785_s27 = sshrl.u32 %s2050_s19, 4  ;;  %s2056_s23 = int_to_ptr.hbm [resolvable:$true] %s265_s23 }
  0x25   : > { %s1783_s30 = sshra.s32 %s2056_s23, 4  ;;  %s1821_s8 = sshll.u32 %s1785_s27, 4  ;;  %s1784_s30 = int_to_ptr.hbm [resolvable:$true] %s1783_s30 }
  0x26   : > { %p1787_p3 = scmp.ne.s32.totalorder %s1821_s8, %s2050_s19  ;;  %s1788_s14 = sadd.s32 1, %s1785_s27 }
  0x27   : > { %p1795_p9 = scmp.lt.s32.totalorder %s1784_s30, %s2211_s0 }
  0x28   : > { %s2234_s14 = smov (!%p1787_p3, %s1788_s14), %s1785_s27 }
  0x29   : > { %s1790_s24 = scalar_lea.hbm %s1784_s30, %s2234_s14 }
  0x2a   : > { %p1791_p4 = scmp.ne.s32.totalorder %s1784_s30, %s1790_s24  ;;  %p1796_p12 = scmp.lt.s32.totalorder %s1794_s17, %s1790_s24 }
  0x2c   : > { %p1792_p6 = pnand %p1791_p4, %p2043_p2  ;;  %p1797_p13 = por %p1796_p12, %p1795_p9 }
  0x2e   : > { %p1793_p7 = pneg %p1792_p6 }
  0x30   : > { %p1798_p0 = pnand %p1797_p13, %p1793_p7 }
  0x32   : > { %1801 = shalt.err (!%p1798_p0)
}
  0x33   : > { %s1802_s27 = sshra.s32 %s268_s18, 4  ;;  %s1929_s16 = smov [#allocation2]   ;;  %s1803_s27 = int_to_ptr.vmem [resolvable:$true] %s1802_s27 }
  0x34   : > { %s1809_s8 = scalar_lea.vmem %s1803_s27, %s2234_s14  ;;  %s1813_s20 = scalar_lea.vmem %s1929_s16, 224 }
  0x35   : > { %p1810_p1 = scmp.ne.s32.totalorder %s1803_s27, %s1809_s8  ;;  %p1815_p6 = scmp.lt.s32.totalorder %s1813_s20, %s1809_s8 }
  0x37   : > { %p1811_p3 = pnand %p1810_p1, %p2043_p2 }
  0x39   : > { %p1812_p4 = pneg %p1811_p3 }
  0x3b   : > { %p1817_p5 = pnand %p1815_p6, %p1812_p4 }
  0x3d   : > { %1820 = shalt.err (!%p1817_p5)
}
  0x3e   : > { %s1930_s30 = smov 896   ;;  %s1931_s24 = smov 56  }
  0x3f   : > { %273 = dma.hbm_to_vmem [thread:$0]  (%p2043_p2), %s2056_s23, %s2050_s19, %s268_s18, %s2040_s15, %s1930_s30, %s1930_s30, %s1931_s24  }
  0x40 PF: > { %279 = sbr.rel (%p2024_p11) target bundleno = 873 (0x369), region = 48  ;;  %s2083_s14 = sand.u32 (!%p2024_p11), 1, %s1884_s25  }
  0x41   : > { %s1629_s17 = smul.u32 (!%p2024_p11), 112, %s2083_s14  ;;  %s282_s22 = scalar_lea.sflag (!%p2024_p11), [#allocation3], %s2083_s14 }
  0x43   : > { %s2087_s21 = scalar_lea.vmem (!%p2024_p11), [#allocation2], %s1629_s17 }
  0x45   : > { %1871 = dma.done.wait (%p2015_p8), %s282_s22, 1792  }
  0x46   : > { %1873 = vsyncadd (%p2015_p8), %s282_s22, 4294965504  ;;  %p2225_p5 = scmp.eq.s32.totalorder %s1991_s28, 0 }
  0x48   : > { %1875 = dma.done.wait (%p2225_p5), [#allocation5], 6272   ;;  %p2226_p11 = pmov %p2225_p5 }
  0x49   : > { %v1570_v0 = vld [vmem:[#allocation4 + $0x38] sm:$0xff]  ;;  %v1569_v4 = vld [vmem:[#allocation4 + $0x30] sm:$0xff]  ;;  %v1568_v8 = vld [vmem:[#allocation4 + $0x28] sm:$0xff]  ;;  %vm750_vm0 = vcmask 130048   ;;  %vm976_vm1 = vcmask 523264   ;;  %vm994_vm2 = vcmask 80896  }
  0x4a   : > { %1877 = vsyncadd (%p2226_p11), [#allocation5], 4294961024  ;;  %v1578_v1 = vld [vmem:[#allocation4 + $0x78] sm:$0xff]  ;;  %754 = vmatpush.bf16.msra.mxu0 %v1570_v0  ;;  %v1577_v5 = vld [vmem:[#allocation4 + $0x70] sm:$0xff]  ;;  %s1299_s22 = sshll.u32 %s2083_s14, 4  ;;  %s1547_s14 = sshll.u32 (%p2020_p10), %s1991_s28, 1 }
  0x4b   : > { %v1586_v2 = vld [vmem:[#allocation4 + $0xb8] sm:$0xff]  ;;  %768 = vmatpush.bf16.msra.mxu1 %v1578_v1  ;;  %v1585_v6 = vld [vmem:[#allocation4 + $0xb0] sm:$0xff]  ;;  %v1576_v9 = vld [vmem:[#allocation4 + $0x68] sm:$0xff]  ;;  %s1624_s11 = sshll.u32 (%p2020_p10), %s1991_s28, 4  ;;  %s1053_s13 = ssub.s32 (%p2020_p10), 5, %s1547_s14 }
  0x4c   : > { %v1594_v3 = vld [vmem:[#allocation4 + $0xf8] sm:$0xff]  ;;  %782 = vmatpush.bf16.msra.mxu2 %v1586_v2  ;;  %v1593_v7 = vld [vmem:[#allocation4 + $0xf0] sm:$0xff]  ;;  %v1584_v10 = vld [vmem:[#allocation4 + $0xa8] sm:$0xff]  ;;  %s2174_s18 = scalar_lea.vmem (%p2020_p10), %s2218_s7, %s1624_s11   ;;  %p1054_p8 = scmp.lt.s32.totalorder (%p2020_p10), %s1053_s13, 2 }
  0x4d   : > { %796 = vmatpush.bf16.msra.mxu3 %v1594_v3  ;;  %v1592_v11 = vld [vmem:[#allocation4 + $0xe8] sm:$0xff]  ;;  %v1567_v12 = vld [vmem:[#allocation4 + $0x20] sm:$0xff]  ;;  %v1566_v16 = vld [vmem:[#allocation4 + $0x18] sm:$0xff] }
  0x4e   : > { %755 = vmatpush.bf16.msra.mxu0 %v1569_v4  ;;  %v1575_v13 = vld [vmem:[#allocation4 + $0x60] sm:$0xff]  ;;  %v1574_v17 = vld [vmem:[#allocation4 + $0x58] sm:$0xff]  ;;  %v1565_v20 = vld [vmem:[#allocation4 + $0x10] sm:$0xff] }
  0x4f   : > { %769 = vmatpush.bf16.msra.mxu1 %v1577_v5  ;;  %v1583_v14 = vld [vmem:[#allocation4 + $0xa0] sm:$0xff]  ;;  %v1582_v18 = vld [vmem:[#allocation4 + $0x98] sm:$0xff]  ;;  %v1573_v21 = vld [vmem:[#allocation4 + $0x50] sm:$0xff] }
  0x50   : > { %783 = vmatpush.bf16.msra.mxu2 %v1585_v6  ;;  %v1591_v15 = vld [vmem:[#allocation4 + $0xe0] sm:$0xff]  ;;  %v1590_v19 = vld [vmem:[#allocation4 + $0xd8] sm:$0xff]  ;;  %v1581_v22 = vld [vmem:[#allocation4 + $0x90] sm:$0xff] }
  0x51   : > { %797 = vmatpush.bf16.msra.mxu3 %v1593_v7  ;;  %v1589_v23 = vld [vmem:[#allocation4 + $0xd0] sm:$0xff]  ;;  %v1564_v24 = vld [vmem:[#allocation4 + $0x8] sm:$0xff]  ;;  %v1563_v28 = vld [vmem:[#allocation4] sm:$0xff] }
  0x52   : > { %756 = vmatpush.bf16.msra.mxu0 %v1568_v8  ;;  %v1572_v25 = vld [vmem:[#allocation4 + $0x48] sm:$0xff]  ;;  %v1571_v29 = vld [vmem:[#allocation4 + $0x40] sm:$0xff]  ;;  %v1602_v34 = vld [vmem:[#allocation4 + $0x138] sm:$0xff] }
  0x53   : > { %770 = vmatpush.bf16.msra.mxu1 %v1576_v9  ;;  %v1580_v26 = vld [vmem:[#allocation4 + $0x88] sm:$0xff]  ;;  %v333_v30 = vld [vmem:[%s2087_s21] sm:$0xff]  ;;  %v1610_v35 = vld [vmem:[#allocation4 + $0x178] sm:$0xff] }
  0x54   : > { %784 = vmatpush.bf16.msra.mxu2 %v1584_v10  ;;  %v1588_v27 = vld [vmem:[#allocation4 + $0xc8] sm:$0xff]  ;;  %v341_v33 = vld [vmem:[%s2087_s21 + $0x40] sm:$0xff]  ;;  %v335_v38 = vld [vmem:[%s2087_s21 + $0x10] sm:$0xff] }
  0x55   : > { %798 = vmatpush.bf16.msra.mxu3 %v1592_v11  ;;  %v340_v31 = vld [vmem:[%s2087_s21 + $0x38] sm:$0xff]  ;;  %v334_v32 = vld [vmem:[%s2087_s21 + $0x8] sm:$0xff]  ;;  %v1579_v36 = vld [vmem:[#allocation4 + $0x80] sm:$0xff] }
  0x56   : > { %757 = vmatpush.bf16.msra.mxu0 %v1567_v12  ;;  %v1587_v37 = vld [vmem:[#allocation4 + $0xc0] sm:$0xff]  ;;  %v342_v39 = vld [vmem:[%s2087_s21 + $0x48] sm:$0xff]  ;;  %v347_v40 = vpack.c.bf16 %v340_v31, %v333_v30  ;;  %v336_v41 = vld [vmem:[%s2087_s21 + $0x18] sm:$0xff]  ;;  %v348_v43 = vpack.c.bf16 %v341_v33, %v334_v32 }
  0x57   : > { %771 = vmatpush.bf16.msra.mxu1 %v1575_v13  ;;  %v343_v42 = vld [vmem:[%s2087_s21 + $0x50] sm:$0xff]  ;;  %v349_v47 = vpack.c.bf16 %v342_v39, %v335_v38  ;;  %v1600_v49 = vld [vmem:[#allocation4 + $0x128] sm:$0xff]  ;;  %v1598_v53 = vld [vmem:[#allocation4 + $0x118] sm:$0xff] }
  0x58   : > { %785 = vmatpush.bf16.msra.mxu2 %v1583_v14  ;;  %v1611_v44 = vld [vmem:[#allocation4 + $0x180] sm:$0xff]  ;;  %v1601_v45 = vld [vmem:[#allocation4 + $0x130] sm:$0xff]  ;;  %v350_v48 = vpack.c.bf16 %v343_v42, %v336_v41  ;;  %v1608_v50 = vld [vmem:[#allocation4 + $0x168] sm:$0xff] }
  0x59   : > { %799 = vmatpush.bf16.msra.mxu3 %v1591_v15  ;;  %v1609_v46 = vld [vmem:[#allocation4 + $0x170] sm:$0xff]  ;;  %v1599_v51 = vld [vmem:[#allocation4 + $0x120] sm:$0xff]  ;;  %v1606_v54 = vld [vmem:[#allocation4 + $0x158] sm:$0xff] }
  0x5a   : > { %758 = vmatpush.bf16.msra.mxu0 %v1566_v16  ;;  %v1607_v52 = vld [vmem:[#allocation4 + $0x160] sm:$0xff]  ;;  %v346_v56 = vld [vmem:[%s2087_s21 + $0x68] sm:$0xff]  ;;  %v1597_v57 = vld [vmem:[#allocation4 + $0x110] sm:$0xff] }
  0x5b   : > { %772 = vmatpush.bf16.msra.mxu1 %v1574_v17  ;;  %v339_v55 = vld [vmem:[%s2087_s21 + $0x30] sm:$0xff]  ;;  %v1596_v60 = vld [vmem:[#allocation4 + $0x108] sm:$0xff]  ;;  %v337_v0 = vld [vmem:[%s2087_s21 + $0x20] sm:$0xff] }
  0x5c   : > { %786 = vmatpush.bf16.msra.mxu2 %v1582_v18  ;;  %v1605_v58 = vld [vmem:[#allocation4 + $0x150] sm:$0xff]  ;;  %v353_v59 = vpack.c.bf16 %v346_v56, %v339_v55  ;;  %v1604_v61 = vld [vmem:[#allocation4 + $0x148] sm:$0xff]  ;;  %v1595_v62 = vld [vmem:[#allocation4 + $0x100] sm:$0xff] }
  0x5d   : > { %800 = vmatpush.bf16.msra.mxu3 %v1590_v19  ;;  %v1603_v63 = vld [vmem:[#allocation4 + $0x140] sm:$0xff]  ;;  %v344_v1 = vld [vmem:[%s2087_s21 + $0x58] sm:$0xff]  ;;  %v338_v2 = vld [vmem:[%s2087_s21 + $0x28] sm:$0xff] }
  0x5e   : > { %759 = vmatpush.bf16.msra.mxu0 %v1565_v20  ;;  %v345_v3 = vld [vmem:[%s2087_s21 + $0x60] sm:$0xff]  ;;  %v351_v4 = vpack.c.bf16 %v344_v1, %v337_v0  ;;  %v1619_v6 = vld [vmem:[%s2214_s3 + $0x38] sm:$0xff]  ;;  %v1617_v8 = vld [vmem:[%s2214_s3 + $0x28] sm:$0xff]  ;;  %s2161_s21 = scalar_lea.vmem [#allocation6], %s1299_s22  }
  0x5f   : > { %773 = vmatpush.bf16.msra.mxu1 %v1573_v21  ;;  %v352_v5 = vpack.c.bf16 %v345_v3, %v338_v2  ;;  %v1618_v7 = vld [vmem:[%s2214_s3 + $0x30] sm:$0xff]  ;;  %v1616_v9 = vld [vmem:[%s2214_s3 + $0x20] sm:$0xff]  ;;  %v1615_v10 = vld [vmem:[%s2214_s3 + $0x18] sm:$0xff] }
  0x60   : > { %787 = vmatpush.bf16.msra.mxu2 %v1581_v22  ;;  %v1614_v11 = vld [vmem:[%s2214_s3 + $0x10] sm:$0xff]  ;;  %v1613_v12 = vld [vmem:[%s2214_s3 + $0x8] sm:$0xff]  ;;  %v1612_v16 = vld [vmem:[%s2214_s3] sm:$0xff] }
  0x61   : > { %801 = vmatpush.bf16.msra.mxu3 %v1589_v23  ;;  %v1742_v17 = vld [vmem:[%s2213_s2] ss:$0 sm:$0xff]  ;;  %v1623_v18 = vld [vmem:[%s2216_s5 + $0x18] sm:$0xff] }
  0x62   : > { %760 = vmatpush.bf16.msra.mxu0 %v1564_v24 }
  0x63   : > { %774 = vmatpush.bf16.msra.mxu1 %v1572_v25 }
  0x64   : > { %788 = vmatpush.bf16.msra.mxu2 %v1580_v26 }
  0x65   : > { %802 = vmatpush.bf16.msra.mxu3 %v1588_v27 }
  0x66   : > { %761 = vmatpush.bf16.msra.mxu0 %v1563_v28 }
  0x67   : > { %775 = vmatpush.bf16.msra.mxu1 %v1571_v29 }
  0x68   : > { %789 = vmatpush.bf16.msra.mxu2 %v1579_v36 }
  0x69   : > { %803 = vmatpush.bf16.msra.mxu3 %v1587_v37  ;;  %762 = vmatmul.bf16.vlgmr.msra.gmra.mxu0 %v347_v40 }
  0x6a   : > { %810 = vmatpush.bf16.msrb.mxu0 %v1602_v34  ;;  %776 = vmatmul.bf16.vlgmr.msra.gmra.mxu1 %v348_v43 }
  0x6b   : > { %824 = vmatpush.bf16.msrb.mxu1 %v1610_v35  ;;  %790 = vmatmul.bf16.vlgmr.msra.gmra.mxu2 %v349_v47  ;;  %v1622_v47 = vld [vmem:[%s2216_s5 + $0x10] sm:$0xff] }
  0x6c   : > { %845 = vmatpush.bf16.msrb.mxu2 %v1611_v44  ;;  %804 = vmatmul.bf16.vlgmr.msra.gmra.mxu3 %v350_v48  ;;  %v1621_v48 = vld [vmem:[%s2216_s5 + $0x8] sm:$0xff] }
  0x6d   : > { %923 = vmatpush.bf16.msrb.mxu3 %v1619_v6 }
  0x6e   : > { %811 = vmatpush.bf16.msrb.mxu0 %v1601_v45 }
  0x6f   : > { %825 = vmatpush.bf16.msrb.mxu1 %v1609_v46 }
  0x70   : > { %984 = vmatpush.bf16.msra.mxu2 %v1623_v18 }
  0x71   : > { %924 = vmatpush.bf16.msrb.mxu3 %v1618_v7 }
  0x72   : > { %812 = vmatpush.bf16.msrb.mxu0 %v1600_v49  ;;  %v1620_v49 = vld [vmem:[%s2216_s5] sm:$0xff] }
  0x73   : > { %826 = vmatpush.bf16.msrb.mxu1 %v1608_v50 }
  0x74   : > { %985 = vmatpush.bf16.msra.mxu2 %v1622_v47 }
  0x75   : > { %925 = vmatpush.bf16.msrb.mxu3 %v1617_v8 }
  0x76   : > { %813 = vmatpush.bf16.msrb.mxu0 %v1599_v51  ;;  %v1743_v51 = vld [vmem:[%s2215_s4] ss:$0 sm:$0xff] }
  0x77   : > { %827 = vmatpush.bf16.msrb.mxu1 %v1607_v52 }
  0x78   : > { %986 = vmatpush.bf16.msra.mxu2 %v1621_v48 }
  0x79   : > { %926 = vmatpush.bf16.msrb.mxu3 %v1616_v9 }
  0x7a   : > { %814 = vmatpush.bf16.msrb.mxu0 %v1598_v53 }
  0x7b   : > { %828 = vmatpush.bf16.msrb.mxu1 %v1606_v54  ;;  %1496 = vmatmul.msk.bf16.vlgmr.msrb.gmra.mxu2 %vm750_vm0, %v353_v59 }
  0x7c   : > { %987 = vmatpush.bf16.msra.mxu2 %v1620_v49 }
  0x7d   : > { %927 = vmatpush.bf16.msrb.mxu3 %v1615_v10 }
  0x7e   : > { %815 = vmatpush.bf16.msrb.mxu0 %v1597_v57 }
  0x7f   : > { %829 = vmatpush.bf16.msrb.mxu1 %v1605_v58  ;;  %v1744_v58 = vld [vmem:[%s2217_s6] ss:$0 sm:$0xff] }
  0x81   : > { %928 = vmatpush.bf16.msrb.mxu3 %v1614_v11 }
  0x82   : > { %816 = vmatpush.bf16.msrb.mxu0 %v1596_v60 }
  0x83   : > { %830 = vmatpush.bf16.msrb.mxu1 %v1604_v61 }
  0x85   : > { %929 = vmatpush.bf16.msrb.mxu3 %v1613_v12 }
  0x86   : > { %817 = vmatpush.bf16.msrb.mxu0 %v1595_v62 }
  0x87   : > { %831 = vmatpush.bf16.msrb.mxu1 %v1603_v63 }
  0x89   : > { %818 = vmatmul.bf16.vlgmr.msrb.gmra.mxu0 %v351_v4  ;;  %930 = vmatpush.bf16.msrb.mxu3 %v1612_v16 }
  0x8a   : > { %832 = vmatmul.bf16.vlgmr.msrb.gmra.mxu1 %v352_v5 }
  0xe6   : > { %v763_v13 = vpop.f32.mrf.mxu0 }
  0xe7   : > { %v777_v14 = vpop.f32.mrf.mxu1  ;;  %v764_v19 = vadd.f32 %v1742_v17, %v763_v13 }
  0xe9   : > { %v778_v23 = vadd.f32 %v777_v14, %v764_v19 }
  0xee   : > { %v791_v15 = vpop.f32.mrf.mxu2  ;;  %v765_v20 = vpop.f32.mrf.mxu0 }
  0xef   : > { %v779_v21 = vpop.f32.mrf.mxu1  ;;  %v805_v24 = vpop.f32.mrf.mxu3  ;;  %v766_v25 = vadd.f32 %v1742_v17, %v765_v20  ;;  %v792_v26 = vadd.f32 %v791_v15, %v778_v23 }
  0xf1   : > { %v780_v27 = vadd.f32 %v779_v21, %v766_v25  ;;  %v806_v30 = vadd.f32 %v805_v24, %v792_v26 }
  0xf6   : > { %v793_v22 = vpop.f32.mrf.mxu2 }
  0xf7   : > { %v794_v32 = vadd.f32 %v793_v22, %v780_v27  ;;  %v807_v34 = vpop.f32.mrf.mxu3 }
  0xf9   : > { %v808_v35 = vadd.f32 %v807_v34, %v794_v32 }
  0xfe   : > { %v847_v31 = vpop.f32.mrf.mxu2 }
 0x106   : > { %v819_v28 = vpop.f32.mrf.mxu0  ;;  %v849_v42 = vpop.f32.mrf.mxu2 }
 0x107   : > { %v833_v29 = vpop.f32.mrf.mxu1  ;;  %v820_v33 = vadd.f32 %v819_v28, %v806_v30 }
 0x109   : > { %v834_v36 = vadd.f32 %v833_v29, %v820_v33 }
 0x10b   : > { %v848_v40 = vadd.f32 %v847_v31, %v834_v36 }
 0x10d   : > { %v852_v44 = vmax.f32 %v848_v40, 0.0 }
 0x10e   : > { %v821_v37 = vpop.f32.mrf.mxu0 }
 0x10f   : > { %v822_v38 = vadd.f32 %v821_v37, %v808_v35  ;;  %v835_v39 = vpop.f32.mrf.mxu1 }
 0x111   : > { %v836_v41 = vadd.f32 %v835_v39, %v822_v38 }
 0x113   : > { %v850_v43 = vadd.f32 %v849_v42, %v836_v41 }
 0x115   : > { %v853_v45 = vmax.f32 %v850_v43, 0.0 }
 0x117   : > { %v854_v46 = vpack.c.bf16 %v853_v45, %v852_v44 }
 0x119   : > { %931 = vmatmul.bf16.vlgmr.msrb.gmra.mxu3 %v854_v46 }
 0x19c   : > { %v932_v50 = vpop.f32.mrf.mxu3 }
 0x19d   : > { %v933_v52 = vadd.f32 %v1743_v51, %v932_v50 }
 0x19f   : > { %v937_v55 = vmax.f32 %v933_v52, 0.0 }
 0x1a4   : > { %v934_v53 = vpop.f32.mrf.mxu3 }
 0x1a5   : > { %v935_v54 = vadd.f32 %v1743_v51, %v934_v53 }
 0x1a7   : > { %v938_v56 = vmax.f32 %v935_v54, 0.0 }
 0x1a9   : > { %v939_v57 = vpack.c.bf16 %v938_v56, %v937_v55 }
 0x1ab   : > { %1545 = vmatmul.msk.bf16.vlgmr.msra.gmra.mxu2 %vm976_vm1, %v939_v57 }
 0x22e   : > { %v989_v59 = vpop.f32.mrf.mxu2 }
 0x22f   : > { %v990_v60 = vadd.f32 %v1744_v58, %v989_v59 }
 0x231   : > { %v995_v61 = vsel %vm994_vm2, %v990_v60, -inf }
 0x232   : > { %996 = vmax.xlane.f32.xlu0 %v995_v61 }
 0x236   : > { %v991_v62 = vpop.f32.mrf.mxu2 }
 0x237   : > { %v992_v63 = vadd.f32 %v1744_v58, %v991_v62 }
 0x239   : > { %v998_v0 = vsel %vm994_vm2, %v992_v63, -inf }
 0x23a   : > { %999 = vmax.xlane.f32.xlu0 %v998_v0 }
 0x2a5   : > { %v997_v1 = vpop.xlane.xlu0 %996 }
 0x2a6   : > { %v1001_v2 = vsub.f32 %v990_v60, %v997_v1 }
 0x2a8   : > { %v1003_v3 = vmul.f32 1.442695, %v1001_v2 }
 0x2aa   : > { %1745 = vpow2.f32 %v1003_v3 }
 0x2ad   : > { %v1000_v4 = vpop.xlane.xlu0 %999 }
 0x2ae   : > { %v1002_v5 = vsub.f32 %v992_v63, %v1000_v4 }
 0x2b0   : > { %v1746_v6 = vpop.eup %1745  ;;  %v1005_v7 = vmul.f32 1.442695, %v1002_v5 }
 0x2b1   : > { %v1007_v8 = vsel %vm994_vm2, %v1746_v6, 0.0 }
 0x2b2   : > { %1747 = vpow2.f32 %v1005_v7  ;;  %1008 = vadd.xlane.f32.xlu1 %v1007_v8 }
 0x2b8   : > { %v1748_v9 = vpop.eup %1747 }
 0x2b9   : > { %v1010_v10 = vsel %vm994_vm2, %v1748_v9, 0.0 }
 0x2ba   : > { %1011 = vadd.xlane.f32.xlu1 %v1010_v10 }
 0x325   : > { %v1009_v11 = vpop.xlane.xlu1 %1008 }
 0x326   : > { %1749 = vrcp.f32 %v1009_v11  ;;  %v1024_v16 = vand.u32 2147483648, %v1009_v11  ;;  %v1022_v18 = vand.u32 2147483647, %v1009_v11  ;;  %vm1018_vm4 = vweird.f32 %v1009_v11 }
 0x328   : > { %v1025_v21 = vor.u32 1.1754944e-38, %v1024_v16  ;;  %vm1023_vm6 = vcmp.eq.f32.partialorder %v1022_v18, 8.507059e+37 }
 0x32c   : > { %v1750_v12 = vpop.eup %1749 }
 0x32d   : > { %v1014_v13 = vmul.f32 %v1750_v12, %v1009_v11  ;;  %v1012_v14 = vpop.xlane.xlu1 %1011  ;;  %vm1019_vm3 = vweird.f32 %v1750_v12 }
 0x32e   : > { %1751 = vrcp.f32 %v1012_v14  ;;  %vm1020_vm5 = vmor %vm1018_vm4, %vm1019_vm3  ;;  %v1038_v27 = vand.u32 2147483648, %v1012_v14  ;;  %v1036_v29 = vand.u32 2147483647, %v1012_v14  ;;  %vm1032_vm8 = vweird.f32 %v1012_v14 }
 0x32f   : > { %v1015_v15 = vsub.f32 1.0, %v1014_v13 }
 0x330   : > { %v1039_v31 = vor.u32 1.1754944e-38, %v1038_v27  ;;  %vm1037_vm10 = vcmp.eq.f32.partialorder %v1036_v29, 8.507059e+37 }
 0x331   : > { %v1016_v17 = vmul.f32 %v1750_v12, %v1015_v15 }
 0x333   : > { %v1017_v19 = vadd.f32 %v1750_v12, %v1016_v17 }
 0x334   : > { %v1752_v20 = vpop.eup %1751 }
 0x335   : > { %v1021_v22 = vsel %vm1020_vm5, %v1750_v12, %v1017_v19  ;;  %v1028_v23 = vmul.f32 %v1752_v20, %v1012_v14  ;;  %vm1033_vm7 = vweird.f32 %v1752_v20 }
 0x336   : > { %v1026_v24 = vsel %vm1023_vm6, %v1025_v21, %v1021_v22  ;;  %vm1034_vm9 = vmor %vm1032_vm8, %vm1033_vm7 }
 0x337   : > { %v1041_v25 = vmul.f32 %v1746_v6, %v1026_v24  ;;  %v1029_v26 = vsub.f32 1.0, %v1028_v23 }
 0x339   : > { %1043 = vst.msk [vmem:[%s2161_s21] sm:$0xff] %vm994_vm2, %v1041_v25  ;;  %v1030_v28 = vmul.f32 %v1752_v20, %v1029_v26 }
 0x33b   : > { %v1031_v30 = vadd.f32 %v1752_v20, %v1030_v28 }
 0x33d   : > { %v1035_v32 = vsel %vm1034_vm9, %v1752_v20, %v1031_v30  ;;  %1051 = sbr.rel (!%p2020_p10) target bundleno = 873 (0x369), region = 60 }
 0x33e   : > { %v1040_v33 = vsel %vm1037_vm10, %v1039_v31, %v1035_v32 }
 0x33f   : > { %v1042_v34 = vmul.f32 %v1748_v9, %v1040_v33 }
 0x341   : > { %1044 = vst.msk [vmem:[%s2161_s21 + $0x8] sm:$0xff] %vm994_vm2, %v1042_v34 }
 0x342   : > { %s2236_s13 = smov (!%p1054_p8, %s1053_s13), 2 }
 0x343   : > { %s1548_s19 = sshll.u32 %s2236_s13, 3 }
 0x344   : > { %p1551_p2 = scmp.eq.s32.totalorder %s1548_s19, 0 }
 0x345   : > { %s2180_s12 = sshrl.u32 (!%p1551_p2), %s2236_s13, 1 }
 0x346   : > { %1062 = sbr.rel (%p1551_p2) target bundleno = 873 (0x369), region = 64  ;;  %p1552_p10 = scmp.le.s32.totalorder (!%p1551_p2), %s2180_s12, 0 }
 0x34b   : > { %1230 = sbr.rel (%p1552_p10) target bundleno = 856 (0x358), region = 146  ;;  %s1894_s28 = smov (!%p1552_p10), %s2174_s18  }
 0x34c   : > { %s1898_s23 = smov (!%p1552_p10), %s2161_s21   ;;  %s1902_s27 = smov (!%p1552_p10), 0  }
 0x34d   : > { %s1906_s8 = smov (!%p1552_p10), 0  }
 0x350 LB: >> { %v1127_v35 = vld [vmem:[%s1900_s23] sm:$0xff]  ;;  %v1129_v36 = vld [vmem:[%s1900_s23 + $0x8] sm:$0xff]  ;;  %s1131_s16 = sadd.s32 1, %s1904_s27  ;;  %s1121_s8 = sadd.s32 1, %s1908_s8   ;;  %s1908_s8 = sphi %s1906_s8, %s1121_s8   ;;  %s1904_s27 = sphi %s1902_s27, %s1903_s27   ;;  %s1900_s23 = sphi %s1898_s23, %s1136_s23   ;;  %s1896_s28 = sphi %s1894_s28, %s1137_s28  }
 0x351   : >> { %1128 = vst [vmem:[%s1896_s28] sm:$0xff] %v1127_v35  ;;  %p1132_p7 = scmp.ge.s32.totalorder %s1131_s16, %s2180_s12  ;;  %p1120_p9 = scmp.ge.s32.totalorder %s1121_s8, %s2180_s12 }
 0x352   : >> { %1130 = vst [vmem:[%s1896_s28 + $0x8] sm:$0xff] %v1129_v36 }
 0x353   : >> { %s2238_s16 = smov (%p1132_p7, %s1131_s16), 0  ;;  %1123 = sbr.rel (!%p1120_p9) target bundleno = 848 (0x350), region = 152 }
 0x354   : >> { %s1553_s20 = sshll.u32 %s2238_s16, 4  ;;  %s1903_s27 = smov %s2238_s16  }
 0x355   : >> { %s1136_s23 = scalar_lea.vmem %s2161_s21, %s1553_s20 [#allocation6]   ;;  %s1137_s28 = scalar_lea.vmem %s2174_s18, %s1553_s20  }
 0x358 PF: > { %s2190_s30 = sand.u32 1, %s2236_s13   ;;  %s1625_s24 = sshll.u32 %s2180_s12, 4 }
 0x359   : > { %s1142_s17 = scalar_lea.vmem %s2161_s21, %s1625_s24 [#allocation6]   ;;  %s1144_s22 = scalar_lea.vmem %s2174_s18, %s1625_s24  }
 0x35a   : > { %p1558_p12 = scmp.le.s32.totalorder %s2190_s30, 0 }
 0x35b   : > { %s1910_s14 = smov (!%p1558_p12), %s1144_s22   ;;  %s1914_s11 = smov (!%p1558_p12), %s1142_s17  }
 0x35c   : > { %1244 = sbr.rel (%p1558_p12) target bundleno = 873 (0x369), region = 157  ;;  %s1918_s15 = smov (!%p1558_p12), 0  }
 0x35d   : > { %s1922_s10 = smov (!%p1558_p12), 0  }
 0x361 LB: >> { %v1154_v37 = vld [vmem:[%s1916_s11] sm:$0xff]  ;;  %s1156_s13 = sadd.s32 1, %s1920_s15  ;;  %s1148_s10 = sadd.s32 1, %s1924_s10   ;;  %s1924_s10 = sphi %s1922_s10, %s1148_s10   ;;  %s1920_s15 = sphi %s1918_s15, %s1919_s15   ;;  %s1916_s11 = sphi %s1914_s11, %s1161_s11   ;;  %s1912_s14 = sphi %s1910_s14, %s1162_s14  }
 0x362   : >> { %1155 = vst [vmem:[%s1912_s14] sm:$0xff] %v1154_v37  ;;  %p1157_p13 = scmp.ge.s32.totalorder %s1156_s13, %s2190_s30  ;;  %p1147_p0 = scmp.ge.s32.totalorder %s1148_s10, %s2190_s30 }
 0x364   : >> { %s2240_s13 = smov (%p1157_p13, %s1156_s13), 0  ;;  %1150 = sbr.rel (!%p1147_p0) target bundleno = 865 (0x361), region = 163 }
 0x365   : >> { %s1559_s21 = sshll.u32 %s2240_s13, 3  ;;  %s1919_s15 = smov %s2240_s13  }
 0x366   : >> { %s1161_s11 = scalar_lea.vmem %s1142_s17, %s1559_s21 [#allocation6]   ;;  %s1162_s14 = scalar_lea.vmem %s1144_s22, %s1559_s21  }
 0x369 PF: > { %p18_p1 = scmp.ge.s32.totalorder %s1994_s29, 5   ;;  %s2227_s24 = smov %s1884_s25 }
 0x36a   : > { %s2228_s25 = smov %s1888_s26  ;;  %s2229_s26 = smov %s2004_s9 }
 0x36b   : > { %s2230_s27 = smov %s1994_s29  ;;  %20 = sbr.rel (!%p18_p1) target bundleno = 4 (0x4), region = 174 }
 0x370   :  { %1178 = vsyncpa [#allocation3], 1 }
 0x371   :  { %1180 = vsyncpa [#allocation3 + $0x1], 1 }
 0x372   :  { %1181 = vsyncpa [#allocation5], 1 }

</bundles_post_ra>
